<compile_context>
chip_gen: v7x
topology: tpu7x:2x2x1
jax: 0.10.0
libtpu: 0.0.40
codegen_flags: <defaults>
</compile_context>

<pallas_src>
import functools

import jax
import jax.numpy as jnp
from jax.experimental import pallas as pl
from jax.experimental.pallas import tpu as pltpu


_LANE = 128
_SUBLANE = 8
_MIB = 1024 * 1024
# Target *input* bytes per (C, TL) tile in the tiled two-pass path.
_TILE_TARGET_BYTES = 8 * _MIB


def _round_up(x, m):
    return ((x + m - 1) // m) * m


def _vmem_capacity_bytes():
    """Per-TensorCore VMEM capacity (trace-time query, v7x-safe fallback)."""
    try:
        return int(pltpu.get_tpu_info().vmem_capacity_bytes)
    except Exception:
        return 64 * _MIB


# --------------------------------------------------------------------------
# Kernels
# --------------------------------------------------------------------------
def _gln_resident_kernel(x_ref, w_ref, b_ref, o_ref, *, eps, inv_count):
    """Whole batch item resident in VMEM: exact two-pass stats + affine."""
    x = x_ref[...].astype(jnp.float32)              # (C, L)
    mean = jnp.sum(x) * inv_count
    d = x - mean
    var = jnp.sum(d * d) * inv_count                # exact E[(x-mean)^2]
    scale = w_ref[...] * jax.lax.rsqrt(var + eps)   # (C, 1) f32
    o_ref[...] = (d * scale + b_ref[...]).astype(o_ref.dtype)


def _gln_stats_kernel(x_ref, mean_ref, rstd_ref, sum_sc, sq_sc, *,
                      eps, inv_count, total_l, tile_l):
    """Pass 1: accumulate per-item sum / sumsq across L tiles, finalize stats."""
    lt = pl.program_id(1)

    @pl.when(lt == 0)
    def _init():
        sum_sc[...] = jnp.zeros_like(sum_sc)
        sq_sc[...] = jnp.zeros_like(sq_sc)

    x = x_ref[...].astype(jnp.float32)              # (C, TL)
    if total_l % tile_l != 0:
        # Ragged last tile: zero the lanes past the true length so the
        # unspecified out-of-bounds block padding never enters the statistics.
        lane = jax.lax.broadcasted_iota(jnp.int32, x.shape, 1)
        x = jnp.where(lane < (total_l - lt * tile_l), x, 0.0)

    sum_sc[...] += jnp.sum(x)                       # running sum
    sq_sc[...] += jnp.sum(x * x)                    # running sum of squares

    @pl.when(lt == pl.num_programs(1) - 1)
    def _finalize():
        # NOTE: single-pass E[x^2] - mean^2 (guarded); fine for typical
        # activations, can cancel when |mean| >> std.
        m = sum_sc[...] * inv_count                 # (1, 1)
        v = jnp.maximum(sq_sc[...] * inv_count - m * m, 0.0)
        mean_ref[...] = m
        rstd_ref[...] = jax.lax.rsqrt(v + eps)


def _gln_apply_kernel(x_ref, w_ref, b_ref, mean_ref, rstd_ref, o_ref):
    """Pass 2: normalize + per-channel affine; fully parallel over (N, L tiles).

    mean_ref / rstd_ref are whole (N,) float32 arrays in SMEM (no per-step DMA).
    """
    n = pl.program_id(0)
    mean = mean_ref[n]                              # f32 scalar from SMEM
    rstd = rstd_ref[n]                              # f32 scalar from SMEM
    scale = w_ref[...] * rstd                       # (C, 1) f32
    x = x_ref[...].astype(jnp.float32)              # (C, TL)
    o_ref[...] = ((x - mean) * scale + b_ref[...]).astype(o_ref.dtype)


# --------------------------------------------------------------------------
# Wrapper
# --------------------------------------------------------------------------
def global_layer_norm(x, weight=None, bias=None, eps=1e-8, *,
                      force_tiled=False, tile_lanes=None):
    """Pallas TPU implementation of MossFormer2 GlobalLayerNorm.forward.

    x: [N, C, L] or [N, C, K, S]
    weight/bias: [C, 1] or [C, 1, 1] (None => elementwise_affine=False)
    """
    orig_shape = x.shape
    if x.ndim == 4:
        N, C, K, S = x.shape
        L = K * S
        x3 = x.reshape(N, C, L)          # collapse of trailing dims: layout-free
    elif x.ndim == 3:
        N, C, L = x.shape
        x3 = x
    else:
        raise ValueError("GlobalLayerNorm expects a 3D or 4D input")

    # Affine params stay in float32 (no round trip through the activation dtype).
    w = jnp.ones((C,), jnp.float32) if weight is None else weight.reshape(C).astype(jnp.float32)
    b = jnp.zeros((C,), jnp.float32) if bias is None else bias.reshape(C).astype(jnp.float32)
    w2 = w[:, None]                      # (C, 1)
    b2 = b[:, None]                      # (C, 1)

    itemsize = x3.dtype.itemsize
    inv_count = 1.0 / float(C * L)
    elems = N * C * L

    # Per-generation VMEM budget.
    vmem_cap = _vmem_capacity_bytes()
    usable = max(vmem_cap - 16 * _MIB, vmem_cap // 2)   # headroom for Mosaic scratch

    # Resident-path footprint estimate for one item, padded to the native
    # (8, 128) tiling: double-buffered in + out, plus ~3 live f32 temporaries.
    c_pad = _round_up(C, _SUBLANE)
    l_pad = _round_up(L, _LANE)
    item_in = c_pad * l_pad * itemsize
    item_f32 = c_pad * l_pad * 4
    resident_peak = 4 * item_in + 3 * item_f32
    use_resident = (not force_tiled) and resident_peak <= usable

    if use_resident:
        kernel = functools.partial(_gln_resident_kernel, eps=float(eps),
                                   inv_count=inv_count)
        out = pl.pallas_call(
            kernel,
            out_shape=jax.ShapeDtypeStruct((N, C, L), x3.dtype),
            grid_spec=pltpu.PrefetchScalarGridSpec(
                num_scalar_prefetch=0,
                grid=(N,),
                in_specs=[
                    pl.BlockSpec((pl.Squeezed(), C, L), lambda n: (n, 0, 0)),
                    pl.BlockSpec((C, 1), lambda n: (0, 0)),
                    pl.BlockSpec((C, 1), lambda n: (0, 0)),
                ],
                out_specs=pl.BlockSpec((pl.Squeezed(), C, L),
                                       lambda n: (n, 0, 0)),
            ),
            compiler_params=pltpu.CompilerParams(
                dimension_semantics=("parallel",),
                vmem_limit_bytes=usable,
            ),
            cost_estimate=pl.CostEstimate(
                flops=6 * elems,
                transcendentals=N,
                bytes_accessed=2 * elems * itemsize,
            ),
        )(x3, w2, b2)
        return out.reshape(orig_shape)

    # ---------------------------- tiled two-pass path ----------------------
    if tile_lanes is not None:
        if tile_lanes % _LANE != 0:
            raise ValueError("tile_lanes must be a multiple of 128")
        tl = tile_lanes
    else:
        # ~8 MiB of input per tile, clamped so double-buffered in + out plus
        # f32 temporaries stay inside the per-generation VMEM budget.
        tl_target = max(_LANE,
                        (_TILE_TARGET_BYTES // (c_pad * itemsize)) // _LANE * _LANE)
        per_lane_col = c_pad * (4 * itemsize + 3 * 4)
        tl_budget = max(_LANE, (usable // per_lane_col) // _LANE * _LANE)
        tl = min(tl_target, tl_budget)
    tl = min(tl, l_pad)
    num_l_tiles = pl.cdiv(L, tl)

    stats_kernel = functools.partial(_gln_stats_kernel, eps=float(eps),
                                     inv_count=inv_count, total_l=L, tile_l=tl)
    mean_arr, rstd_arr = pl.pallas_call(
        stats_kernel,
        out_shape=(
            jax.ShapeDtypeStruct((N, 1, 1), jnp.float32),
            jax.ShapeDtypeStruct((N, 1, 1), jnp.float32),
        ),
        grid_spec=pltpu.PrefetchScalarGridSpec(
            num_scalar_prefetch=0,
            grid=(N, num_l_tiles),
            in_specs=[
                pl.BlockSpec((pl.Squeezed(), C, tl), lambda n, l: (n, 0, l)),
            ],
            out_specs=[
                pl.BlockSpec((pl.Squeezed(), 1, 1), lambda n, l: (n, 0, 0)),
                pl.BlockSpec((pl.Squeezed(), 1, 1), lambda n, l: (n, 0, 0)),
            ],
            scratch_shapes=[pltpu.VMEM((1, 1), jnp.float32),
                            pltpu.VMEM((1, 1), jnp.float32)],
        ),
        compiler_params=pltpu.CompilerParams(
            dimension_semantics=("parallel", "arbitrary"),
            vmem_limit_bytes=usable,
        ),
        cost_estimate=pl.CostEstimate(
            flops=3 * elems,
            transcendentals=N,
            bytes_accessed=elems * itemsize,
        ),
    )(x3)

    # Tiny (8N bytes) reshapes feeding the SMEM specs below.
    mean_vec = mean_arr.reshape(N)
    rstd_vec = rstd_arr.reshape(N)

    out = pl.pallas_call(
        _gln_apply_kernel,
        out_shape=jax.ShapeDtypeStruct((N, C, L), x3.dtype),
        grid_spec=pltpu.PrefetchScalarGridSpec(
            num_scalar_prefetch=0,
            grid=(N, num_l_tiles),
            in_specs=[
                pl.BlockSpec((pl.Squeezed(), C, tl), lambda n, l: (n, 0, l)),
                pl.BlockSpec((C, 1), lambda n, l: (0, 0)),
                pl.BlockSpec((C, 1), lambda n, l: (0, 0)),
                pl.BlockSpec(memory_space=pltpu.MemorySpace.SMEM),
                pl.BlockSpec(memory_space=pltpu.MemorySpace.SMEM),
            ],
            out_specs=pl.BlockSpec((pl.Squeezed(), C, tl),
                                   lambda n, l: (n, 0, l)),
        ),
        compiler_params=pltpu.CompilerParams(
            dimension_semantics=("parallel", "parallel"),
            vmem_limit_bytes=usable,
        ),
        cost_estimate=pl.CostEstimate(
            flops=3 * elems,
            transcendentals=0,
            bytes_accessed=2 * elems * itemsize,
        ),
    )(x3, w2, b2, mean_vec, rstd_vec)
    return out.reshape(orig_shape)


# --------------------------------------------------------------------------
# Reference + self-test
# --------------------------------------------------------------------------
def _reference_gln(x, weight, bias, eps=1e-8):
    axes = (1, 2) if x.ndim == 3 else (1, 2, 3)
    mean = jnp.mean(x, axis=axes, keepdims=True)
    var = jnp.mean((x - mean) ** 2, axis=axes, keepdims=True)
    return weight * (x - mean) / jnp.sqrt(var + eps) + bias


if __name__ == "__main__":
    key = jax.random.PRNGKey(0)
    k1, k2, k3, k4, k5 = jax.random.split(key, 5)

    # ---- 4D case: x [N, C, K, S], params (C, 1, 1)  (resident path) ----
    N, C, K, S = 2, 4, 16, 16
    x4 = jax.random.normal(k1, (N, C, K, S), dtype=jnp.float32)
    w4 = jnp.ones((C, 1, 1), dtype=jnp.float32)
    b4 = jnp.zeros((C, 1, 1), dtype=jnp.float32)
    out4 = jax.block_until_ready(global_layer_norm(x4, w4, b4, eps=1e-8))
    ref4 = _reference_gln(x4, w4, b4, eps=1e-8)
    assert out4.shape == x4.shape
    assert jnp.allclose(out4, ref4, atol=3e-5, rtol=3e-5)

    # ---- 3D case: x [N, C, L], params (C, 1)  (resident path) ----
    L = 256
    x3 = jax.random.normal(k2, (N, C, L), dtype=jnp.float32)
    w3 = 0.5 + jax.random.uniform(k3, (C, 1), dtype=jnp.float32)
    b3 = 0.1 * jax.random.normal(k4, (C, 1), dtype=jnp.float32)
    out3 = jax.block_until_ready(global_layer_norm(x3, w3, b3, eps=1e-8))
    ref3 = _reference_gln(x3, w3, b3, eps=1e-8)
    assert out3.shape == x3.shape
    assert jnp.allclose(out3, ref3, atol=3e-5, rtol=3e-5)

    # ---- Non-(8,128)-aligned shape, resident path (no wrapper pad/slice) ----
    C2, L2 = 6, 200
    x_odd = jax.random.normal(k5, (N, C2, L2), dtype=jnp.float32)
    w_odd = jnp.ones((C2, 1), dtype=jnp.float32)
    b_odd = jnp.zeros((C2, 1), dtype=jnp.float32)
    out_odd = jax.block_until_ready(global_layer_norm(x_odd, w_odd, b_odd))
    ref_odd = _reference_gln(x_odd, w_odd, b_odd)
    assert out_odd.shape == x_odd.shape
    assert jnp.allclose(out_odd, ref_odd, atol=3e-5, rtol=3e-5)

    # ---- Tiled two-pass path (forced), ragged last L tile ----
    C3, L3 = 16, 1000
    x_big = jax.random.normal(k1, (N, C3, L3), dtype=jnp.float32)
    w_big = 0.5 + jax.random.uniform(k2, (C3, 1), dtype=jnp.float32)
    b_big = 0.1 * jax.random.normal(k3, (C3, 1), dtype=jnp.float32)
    out_big = jax.block_until_ready(
        global_layer_norm(x_big, w_big, b_big, force_tiled=True, tile_lanes=256))
    ref_big = _reference_gln(x_big, w_big, b_big)
    assert out_big.shape == x_big.shape
    assert jnp.allclose(out_big, ref_big, atol=3e-5, rtol=3e-5)

    # ---- bf16 input (resident path), loose tolerance for output cast ----
    x_bf = jax.random.normal(k4, (N, 8, 160), dtype=jnp.float32).astype(jnp.bfloat16)
    w_bf = jnp.ones((8, 1), dtype=jnp.float32)
    b_bf = jnp.zeros((8, 1), dtype=jnp.float32)
    out_bf = jax.block_until_ready(global_layer_norm(x_bf, w_bf, b_bf))
    ref_bf = _reference_gln(x_bf.astype(jnp.float32), w_bf, b_bf)
    assert out_bf.shape == x_bf.shape
    assert jnp.allclose(out_bf.astype(jnp.float32), ref_bf, atol=2e-2, rtol=2e-2)

    print("KERNEL_OK")
</pallas_src>

<mosaic_0001>
module attributes {stable_mosaic.version = 11 : i64} {
  func.func @_gln_resident_kernel(%arg0: i32, %arg1: memref<1x4x256xf32, #tpu.memory_space<vmem>>, %arg2: memref<4x1xf32, #tpu.memory_space<vmem>>, %arg3: memref<4x1xf32, #tpu.memory_space<vmem>>, %arg4: memref<1x4x256xf32, #tpu.memory_space<vmem>>) attributes {dimension_semantics = [#tpu.dimension_semantics<parallel>], iteration_bounds = array<i64: 2>, scalar_prefetch = 0 : i64, scratch_operands = 0 : i64, tpu.core_type = #tpu.core_type<tc>, window_params = [{transform_indices = @transform_0, window_bounds = array<i64: 1, 4, 256>}, {pipeline_mode = #tpu.pipeline_mode<synchronous>, transform_indices = @transform_1, window_bounds = array<i64: 4, 1>}, {pipeline_mode = #tpu.pipeline_mode<synchronous>, transform_indices = @transform_2, window_bounds = array<i64: 4, 1>}, {transform_indices = @transform_3, window_bounds = array<i64: 1, 4, 256>}]} {
    %c0 = arith.constant 0 : index
    %c0_0 = arith.constant 0 : index
    %c0_1 = arith.constant 0 : index
    %0 = vector.load %arg1[%c0, %c0_0, %c0_1] : memref<1x4x256xf32, #tpu.memory_space<vmem>>, vector<1x4x256xf32>
    %1 = vector.shape_cast %0 : vector<1x4x256xf32> to vector<4x256xf32>
    %2 = vector.shape_cast %1 : vector<4x256xf32> to vector<1x4x256xf32>
    %cst = arith.constant dense<0.000000e+00> : vector<1xf32>
    %3 = vector.multi_reduction <add>, %2, %cst [1, 2] : vector<1x4x256xf32> to vector<1xf32>
    %4 = vector.shape_cast %3 : vector<1xf32> to vector<1x1x1xf32>
    %5 = vector.extract %4[0, 0, 0] : f32 from vector<1x1x1xf32>
    %cst_2 = arith.constant 9.765625E-4 : f32
    %6 = arith.mulf %5, %cst_2 : f32
    %7 = vector.broadcast %6 : f32 to vector<4x256xf32>
    %8 = arith.subf %1, %7 : vector<4x256xf32>
    %9 = arith.mulf %8, %8 : vector<4x256xf32>
    %10 = vector.shape_cast %9 : vector<4x256xf32> to vector<1x4x256xf32>
    %cst_3 = arith.constant dense<0.000000e+00> : vector<1xf32>
    %11 = vector.multi_reduction <add>, %10, %cst_3 [1, 2] : vector<1x4x256xf32> to vector<1xf32>
    %12 = vector.shape_cast %11 : vector<1xf32> to vector<1x1x1xf32>
    %13 = vector.extract %12[0, 0, 0] : f32 from vector<1x1x1xf32>
    %cst_4 = arith.constant 9.765625E-4 : f32
    %14 = arith.mulf %13, %cst_4 : f32
    %c0_5 = arith.constant 0 : index
    %c0_6 = arith.constant 0 : index
    %15 = vector.load %arg2[%c0_5, %c0_6] : memref<4x1xf32, #tpu.memory_space<vmem>>, vector<4x1xf32>
    %cst_7 = arith.constant 9.99999993E-9 : f32
    %16 = arith.addf %14, %cst_7 : f32
    %17 = math.rsqrt %16 : f32
    %18 = vector.broadcast %17 : f32 to vector<4x1xf32>
    %19 = arith.mulf %15, %18 : vector<4x1xf32>
    %20 = vector.broadcast %19 : vector<4x1xf32> to vector<4x256xf32>
    %21 = arith.mulf %8, %20 : vector<4x256xf32>
    %c0_8 = arith.constant 0 : index
    %c0_9 = arith.constant 0 : index
    %22 = vector.load %arg3[%c0_8, %c0_9] : memref<4x1xf32, #tpu.memory_space<vmem>>, vector<4x1xf32>
    %23 = vector.broadcast %22 : vector<4x1xf32> to vector<4x256xf32>
    %24 = arith.addf %21, %23 : vector<4x256xf32>
    %c0_10 = arith.constant 0 : index
    %c0_11 = arith.constant 0 : index
    %c0_12 = arith.constant 0 : index
    %25 = vector.load %arg4[%c0_10, %c0_11, %c0_12] : memref<1x4x256xf32, #tpu.memory_space<vmem>>, vector<1x4x256xf32>
    %26 = vector.shape_cast %25 : vector<1x4x256xf32> to vector<4x256xf32>
    %27 = vector.shape_cast %24 : vector<4x256xf32> to vector<1x4x256xf32>
    tpu.vector_store %arg4[%c0_10, %c0_11, %c0_12], %27 {strides = array<i32>} : memref<1x4x256xf32, #tpu.memory_space<vmem>>, vector<1x4x256xf32>,
    return
  }
  func.func @transform_0(%arg0: i32) -> (i32, i32, i32) {
    %c0_i32 = arith.constant 0 : i32
    %c0_i32_0 = arith.constant 0 : i32
    %c0_i32_1 = arith.constant 0 : i32
    return %arg0, %c0_i32, %c0_i32_0 : i32, i32, i32
  }
  func.func @transform_1(%arg0: i32) -> (i32, i32) {
    %c0_i32 = arith.constant 0 : i32
    %c0_i32_0 = arith.constant 0 : i32
    %c0_i32_1 = arith.constant 0 : i32
    return %c0_i32, %c0_i32_0 : i32, i32
  }
  func.func @transform_2(%arg0: i32) -> (i32, i32) {
    %c0_i32 = arith.constant 0 : i32
    %c0_i32_0 = arith.constant 0 : i32
    %c0_i32_1 = arith.constant 0 : i32
    return %c0_i32, %c0_i32_0 : i32, i32
  }
  func.func @transform_3(%arg0: i32) -> (i32, i32, i32) {
    %c0_i32 = arith.constant 0 : i32
    %c0_i32_0 = arith.constant 0 : i32
    %c0_i32_1 = arith.constant 0 : i32
    return %arg0, %c0_i32, %c0_i32_0 : i32, i32, i32
  }
}

</mosaic_0001>

<bundles_post_ra>
// kernel: tpu_custom_call.1
= control target key start
LH: loop header
LB: loop body
LE: loop exit
PB: predicated region body
PF: predicated region fallthrough
CT: control target
= control target key end

     0   :  { %8 = vsyncpa [#allocation3], 0  ;;  %s716_s0 = inlined_call_operand.hbm [shape: f32[2,4,256], index: 0, kind: input, shape index: {}]   ;;  %s717_s1 = inlined_call_operand.vmem [shape: f32[4,1], index: 1, kind: input, shape index: {}]   ;;  %s718_s2 = inlined_call_operand.vmem [shape: f32[4,1], index: 2, kind: input, shape index: {}]   ;;  %s719_s3 = inlined_call_operand.hbm [shape: f32[2,4,256], index: 3, kind: output, shape index: {}]  }
   0x1   :  { %10 = vsyncpa [#allocation3 + $0x1], 0 }
   0x2   :  { %11 = vsyncpa [#allocation4], 0 }
   0x3   :  { %13 = vsyncpa [#allocation4 + $0x1], 0  ;;  %s541_s12 = smov 0   ;;  %s543_s13 = smov 0  }
   0x4   :  { %s545_s14 = smov 0   ;;  %s547_s15 = smov 0  }
   0x5 LB: > { %s562_s16 = sadd.s32 4294967295, %s515_s15   ;;  %s344_s17 = sadd.s32 4294967294, %s515_s15   ;;  %s515_s15 = sphi %s547_s15, %s734_s15   ;;  %s511_s14 = sphi %s545_s14, %s733_s14   ;;  %s507_s13 = sphi %s543_s13, %s732_s13   ;;  %s503_s12 = sphi %s541_s12, %s731_s12  }
   0x6   : > { %s566_s18 = sadd.s32 1, %s515_s15   ;;  %s26_s19 = sadd.s32 1, %s511_s14 }
   0x7   : > { %s23_s20 = ssub.s32 %s515_s15, %s566_s18  ;;  %p33_p0 = scmp.ne.s32.totalorder %s511_s14, %s507_s13 }
   0x8   : > { %p24_p1 = scmp.eq.s32.totalorder %s23_s20, 0  ;;  %p34_p2 = scmp.eq.s32.totalorder %s515_s15, 0 }
   0x9   : > { %p39_p3 = scmp.ne.s32.totalorder %s507_s13, %s503_s12  ;;  %p40_p4 = scmp.eq.s32.totalorder %s562_s16, 0 }
   0xa   : > { %s578_s21 = scalar_select %p24_p1, %s511_s14, %s26_s19  }
   0xb   : > { %p580_p5 = por %p34_p2, %p33_p0  ;;  %p584_p6 = por %p40_p4, %p39_p3 }
   0xc   : > { %p105_p7 = scmp.eq.s32.totalorder %s562_s16, 1  ;;  %p111_p8 = scmp.eq.s32.totalorder %s344_s17, 1 }
   0xd   : > { %p378_p10 = scmp.lt.s32.totalorder %s515_s15, 2  ;;  %s137_s26 = sand.u32 1, %s511_s14  }
   0xe   : > { %p591_p11 = por %p105_p7, %p33_p0  ;;  %p595_p12 = por %p111_p8, %p39_p3 }
   0xf   : > { %s358_s27 = sshll.u32 %s515_s15, 7  ;;  %s347_s28 = sshll.u32 %s137_s26, 3 }
  0x10   : > { %s723_s24 = scalar_select %p591_p11, 1, 0 }
  0x11   : > { %s724_s25 = scalar_select %p595_p12, 1, 0 }
  0x12   : > { %s604_s4 = scalar_lea.hbm %s716_s0, %s358_s27  ;;  %s141_s5 = scalar_lea.vmem [#allocation2], %s347_s28 }
  0x13   : > { %s149_s6 = sshll.u32 %s141_s5, 4  ;;  %p608_p13 = pnand %p378_p10, %p580_p5  ;;  %s612_s6 = int_to_ptr.vmem [resolvable:$true] %s149_s6 }
  0x14   : > { %s138_s8 = scalar_lea.sflag [#allocation3], %s137_s26  ;;  %s419_s9 = scalar_lea.hbm %s604_s4, 128 }
  0x15   : > { %p420_p2 = scmp.ne.s32.totalorder %s604_s4, %s419_s9  ;;  %p421_p3 = pneg %p608_p13 }
  0x16   : > { %s424_s17 = scalar_lea.hbm %s716_s0, 256  ;;  %p425_p5 = scmp.lt.u32.totalorder %s604_s4, %s716_s0 }
  0x17   : > { %p422_p4 = pnand %p421_p3, %p420_p2  ;;  %p426_p8 = scmp.lt.u32.totalorder %s424_s17, %s419_s9 }
  0x18   : > { %p428_p9 = scmp.lt.u32.totalorder %s419_s9, %s604_s4 }
  0x19   : > { %p423_p7 = pneg %p422_p4  ;;  %p427_p10 = por %p426_p8, %p425_p5 }
  0x1b   : > { %p429_p0 = por %p428_p9, %p427_p10 }
  0x1d   : > { %p430_p1 = pnand %p429_p0, %p423_p7 }
  0x1f   : > { %433 = shalt.err (!%p430_p1)
}
  0x20   : > { %s434_s22 = scalar_lea.vmem %s612_s6, 128  ;;  %s517_s26 = smov [#allocation2]  }
  0x21   : > { %p435_p2 = scmp.ne.s32.totalorder %s612_s6, %s434_s22  ;;  %s439_s27 = sshll.u32 %s517_s26, 4  ;;  %s440_s27 = int_to_ptr.vmem [resolvable:$false] %s439_s27 }
  0x22   : > { %s441_s28 = scalar_lea.vmem %s440_s27, 256  ;;  %p442_p11 = scmp.lt.s32.totalorder %s612_s6, %s440_s27 }
  0x23   : > { %p437_p4 = pnand %p435_p2, %p421_p3  ;;  %p443_p5 = scmp.lt.s32.totalorder %s441_s28, %s434_s22 }
  0x25   : > { %p438_p12 = pneg %p437_p4  ;;  %p444_p8 = por %p443_p5, %p442_p11 }
  0x27   : > { %p445_p9 = pnand %p444_p8, %p438_p12 }
  0x29   : > { %448 = shalt.err (!%p445_p9)
}
  0x2a   : > { %373 = dma.hbm_to_vmem [thread:$0]  (!%p608_p13), %s604_s4, 128, %s612_s6, %s138_s8  }
  0x2b   : > { %p726_p0 = scmp.lt.s32.totalorder %s515_s15, 3  ;;  %p727_p1 = scmp.ge.s32.totalorder %s515_s15, 1 }
  0x2d   : > { %p155_p3 = pnand %p727_p1, %p726_p0 }
  0x2e   : > { %s646_s29 = sand.u32 (!%p155_p3), 1, %s507_s13  }
  0x2f   : > { %158 = sbr.rel (%p155_p3) target bundleno = 700 (0x2bc), region = 32  ;;  %s351_s30 = sshll.u32 (!%p155_p3), %s646_s29, 3 }
  0x30   : > { %s161_s5 = scalar_lea.sflag (!%p155_p3), [#allocation3], %s646_s29  ;;  %s164_s7 = scalar_lea.vmem (!%p155_p3), [#allocation2], %s351_s30 }
  0x36   : > { %494 = dma.done.wait (%p584_p6), %s161_s5, 128  }
  0x37   : > { %496 = vsyncadd (%p584_p6), %s161_s5, 4294967168  ;;  %vm191_vm0 = vcmask 1043456   ;;  %v187_v0 = vld [vmem:[%s164_s7] sm:$0xff]  ;;  %v518_v22 = vmov 0   ;;  %v519_v33 = vmov 839922192   ;;  %v238_v35 = vlaneseq }
  0x38   : > { %v189_v1 = vcombine.high %v187_v0, %v187_v0  ;;  %v192_v2 = vsel %vm191_vm0, %v187_v0, 0.0  ;;  %414 = vset.pattern.permute.xlu1 %v518_v22  ;;  %415 = vset.pattern.permute.xlu0 %v518_v22  ;;  %v224_v29 = vld [vmem:[%s717_s1] sm:$0xf]  ;;  %v236_v34 = vunpack.c.l.s4 %v519_v33  ;;  %s359_s22 = sshll.u32 %s562_s16, 7  ;;  %s186_s26 = scalar_lea.vmem [#allocation5], %s351_s30 }
  0x39   : > { %v244_v32 = vld [vmem:[%s718_s2] sm:$0xf]  ;;  %v239_v37 = vshrl.u32 %v238_v35, 7  ;;  %s274_s27 = sshll.u32 %s186_s26, 4  ;;  %s672_s7 = scalar_lea.hbm %s719_s3, %s359_s22  ;;  %s674_s27 = int_to_ptr.vmem [resolvable:$true] %s274_s27 }
  0x3a   : > { %v193_v3 = vsel %vm191_vm0, %v189_v1, 0.0  ;;  %v237_v36 = vunpack.c.0.s8 %v236_v34  ;;  %p728_p11 = scmp.ne.s32.totalorder %s723_s24, 0  ;;  %s520_s16 = smov [#allocation5]  }
  0x3b   : > { %v194_v4 = vadd.f32 %v193_v3, %v192_v2  ;;  %s453_s30 = sshll.u32 %s520_s16, 4  ;;  %s454_s30 = int_to_ptr.vmem [resolvable:$false] %s453_s30 }
  0x3c   : > { %v240_v38 = vsub.s32 %v237_v36, %v239_v37  ;;  %p456_p7 = scmp.lt.s32.totalorder %s674_s27, %s454_s30 }
  0x3d   : > { %195 = vadd.xlane.f32.xlu0 %v194_v4 }
  0xca   : > { %v196_v5 = vpop.xlane.xlu0 %195 }
  0xcb   : > { %v197_v6 = vrot.slane %v196_v5, 4 }
  0xcd   : > { %v198_v7 = vadd.f32 %v197_v6, %v196_v5 }
  0xcf   : > { %v199_v8 = vrot.slane %v198_v7, 2 }
  0xd1   : > { %v200_v9 = vadd.f32 %v199_v8, %v198_v7 }
  0xd3   : > { %v201_v10 = vrot.slane %v200_v9, 1 }
  0xd5   : > { %v202_v11 = vadd.f32 %v201_v10, %v200_v9 }
  0xd7   : > { %360 = vpush %v202_v11 }
 0x108   : > { %s361_s4 = spop %360 }
 0x109   : > { %s204_s23 = smul.f32 0.0009765625, %s361_s4  ;;  %s260_s4 = scalar_lea.sflag [#allocation4], %s646_s29 }
 0x10b   : > { %v205_v12 = vstv %s204_s23  ;;  %s449_s23 = scalar_lea.vmem %s674_s27, 128 }
 0x10c   : > { %v206_v13 = vsub.f32 %v187_v0, %v205_v12  ;;  %p450_p6 = scmp.ne.s32.totalorder %s674_s27, %s449_s23 }
 0x10e   : > { %v207_v14 = vmul.f32 %v206_v13, %v206_v13  ;;  %p451_p12 = pnand %p450_p6, %p728_p11 }
 0x110   : > { %v209_v15 = vcombine.high %v207_v14, %v207_v14  ;;  %v211_v16 = vsel %vm191_vm0, %v207_v14, 0.0  ;;  %p452_p13 = pneg %p451_p12 }
 0x112   : > { %v212_v17 = vsel %vm191_vm0, %v209_v15, 0.0 }
 0x113   : > { %v213_v18 = vadd.f32 %v212_v17, %v211_v16 }
 0x115   : > { %214 = vadd.xlane.f32.xlu0 %v213_v18 }
 0x1a2   : > { %v215_v19 = vpop.xlane.xlu0 %214 }
 0x1a3   : > { %v216_v20 = vrot.slane %v215_v19, 4 }
 0x1a5   : > { %v217_v21 = vadd.f32 %v216_v20, %v215_v19 }
 0x1a7   : > { %v218_v23 = vrot.slane %v217_v21, 2 }
 0x1a9   : > { %v219_v24 = vadd.f32 %v218_v23, %v217_v21 }
 0x1ab   : > { %v220_v25 = vrot.slane %v219_v24, 1 }
 0x1ad   : > { %v221_v26 = vadd.f32 %v220_v25, %v219_v24 }
 0x1af   : > { %362 = vpush %v221_v26 }
 0x1e0   : > { %s363_s6 = spop %362 }
 0x1e1   : > { %s223_s8 = smul.f32 0.0009765625, %s363_s6  ;;  %s455_s6 = scalar_lea.vmem %s454_s30, 256 }
 0x1e2   : > { %p457_p10 = scmp.lt.s32.totalorder %s455_s6, %s449_s23 }
 0x1e3   : > { %s225_s9 = sadd.f32 1e-08, %s223_s8 }
 0x1e4   : > { %p458_p2 = por %p457_p10, %p456_p7 }
 0x1e5   : > { %v226_v27 = vstv %s225_s9 }
 0x1e6   : > { %417 = vrsqrt.f32 %v226_v27  ;;  %p459_p4 = pnand %p458_p2, %p452_p13 }
 0x1f0   : > { %v418_v28 = vpop.eup %417 }
 0x1f1   : > { %364 = vpush %v418_v28 }
 0x222   : > { %s365_s17 = spop %364 }
 0x223   : > { %v229_v30 = vstv %s365_s17 }
 0x224   : > { %v230_v31 = vmul.f32 %v229_v30, %v224_v29 }
 0x226   : > { %233 = vperm.xlu1 %414, %v230_v31  }
 0x22a   : > { %247 = vperm.xlu1 %414, %v244_v32  }
 0x2a5   : > { %v234_v39 = vpop.permute.xlu1 %233 }
 0x2a6   : > { %v241_v40 = vrot.slane %v234_v39, %v240_v38 }
 0x2a8   : > { %v243_v42 = vmul.f32 %v241_v40, %v206_v13 }
 0x2a9   : > { %v248_v41 = vpop.permute.xlu1 %247 }
 0x2aa   : > { %v255_v43 = vrot.slane %v248_v41, %v240_v38 }
 0x2ac   : > { %v257_v44 = vadd.f32 %v255_v43, %v243_v42 }
 0x2ae   : > { %258 = vst [vmem:[%s186_s26] sm:$0xff] %v257_v44 }
 0x2af   : > { %462 = shalt.err (!%p459_p4)
}
 0x2b0   : > { %s463_s29 = scalar_lea.hbm %s672_s7, 128  ;;  %s467_s10 = scalar_lea.hbm %s719_s3, 256 }
 0x2b1   : > { %p464_p5 = scmp.ne.s32.totalorder %s672_s7, %s463_s29  ;;  %p468_p0 = scmp.lt.u32.totalorder %s672_s7, %s719_s3 }
 0x2b2   : > { %p469_p1 = scmp.lt.u32.totalorder %s467_s10, %s463_s29  ;;  %p471_p6 = scmp.lt.u32.totalorder %s463_s29, %s672_s7 }
 0x2b3   : > { %p465_p8 = pnand %p464_p5, %p728_p11 }
 0x2b4   : > { %p470_p3 = por %p469_p1, %p468_p0 }
 0x2b5   : > { %p466_p9 = pneg %p465_p8 }
 0x2b6   : > { %p472_p12 = por %p471_p6, %p470_p3 }
 0x2b8   : > { %p473_p13 = pnand %p472_p12, %p466_p9 }
 0x2ba   : > { %476 = shalt.err (!%p473_p13)
}
 0x2bb   : > { %368 = dma.vmem_to_hbm [thread:$0]  (%p728_p11), %s674_s27, 128, %s672_s7, %s260_s4  }
 0x2bc PF: > { %s286_s19 = sand.u32 1, %s503_s12   ;;  %p729_p7 = scmp.ne.s32.totalorder %s724_s25, 0 }
 0x2bd   : > { %p730_p10 = scmp.ge.s32.totalorder %s515_s15, 2  ;;  %s287_s20 = scalar_lea.sflag [#allocation4], %s286_s19 }
 0x2bf   : > { %p375_p2 = pnand %p730_p10, %p729_p7 }
 0x2c1   : > { %498 = dma.done.wait (!%p375_p2), %s287_s20, 128  }
 0x2c2   : > { %500 = vsyncadd (!%p375_p2), %s287_s20, 4294967168  ;;  %p16_p4 = scmp.ge.s32.totalorder %s566_s18, 4   ;;  %s731_s12 = smov %s507_s13 }
 0x2c3   : > { %s732_s13 = smov %s511_s14  ;;  %s733_s14 = smov %s578_s21 }
 0x2c4   : > { %s734_s15 = smov %s566_s18  ;;  %18 = sbr.rel (!%p16_p4) target bundleno = 5 (0x5), region = 77 }
 0x2cb   :  { %292 = vsyncpa [#allocation3], 1 }
 0x2cc   :  { %294 = vsyncpa [#allocation3 + $0x1], 1 }
 0x2cd   :  { %295 = vsyncpa [#allocation4], 1 }
 0x2ce   :  { %297 = vsyncpa [#allocation4 + $0x1], 1 }

</bundles_post_ra>
